<compile_context>
chip_gen: v5e
topology: v5e:2x2
jax: 0.10.0
libtpu: 0.0.40
codegen_flags: <defaults>
</compile_context>

<pallas_src>
import math
import functools

import jax
import jax.numpy as jnp
from jax import lax
from jax.experimental import pallas as pl


# ---------------------------------------------------------------------------
# Fused Pallas kernel: projections + per-head attention + output projection
# ---------------------------------------------------------------------------

def _mha_fused_kernel(x_ref, wqkv_ref, bqkv_ref, wo_ref, bo_ref, o_ref, *,
                      num_heads, d_k, scale):
    # x_ref    : (3, S, D)   stacked [Q, K, V] inputs
    # wqkv_ref : (3, D, D)   stacked [Wq.T, Wk.T, Wv.T]
    # bqkv_ref : (3, 1, D)   stacked biases
    # wo_ref   : (D, D)      Wo.T
    # bo_ref   : (1, D)
    # o_ref    : (S, D)

    # Input projections (all MXU, activations never leave VMEM/vregs).
    q = jnp.dot(x_ref[0], wqkv_ref[0], preferred_element_type=jnp.float32) + bqkv_ref[0]
    k = jnp.dot(x_ref[1], wqkv_ref[1], preferred_element_type=jnp.float32) + bqkv_ref[1]
    v = jnp.dot(x_ref[2], wqkv_ref[2], preferred_element_type=jnp.float32) + bqkv_ref[2]

    # Per-head attention; heads are static lane slices of the (S, D) slab.
    # The Python loop unrolls at trace time (num_heads is a compile-time int).
    head_outs = []
    for h in range(num_heads):
        lo = h * d_k
        qh = q[:, lo:lo + d_k]                       # (S, d_k)
        kh = k[:, lo:lo + d_k]                       # (S, d_k)
        vh = v[:, lo:lo + d_k]                       # (S, d_k)

        # Q @ K^T without materializing a transpose: contract last dims.
        scores = lax.dot_general(
            qh, kh,
            dimension_numbers=(((1,), (1,)), ((), ())),
            preferred_element_type=jnp.float32) * scale          # (S, S)

        # Numerically stable softmax(dim=-1), matching torch.nn.Softmax.
        scores = scores - jnp.max(scores, axis=-1, keepdims=True)
        probs = jnp.exp(scores)
        probs = probs * pl.reciprocal(
            jnp.sum(probs, axis=-1, keepdims=True), approx=True)

        head_outs.append(
            jnp.dot(probs, vh, preferred_element_type=jnp.float32))  # (S, d_k)

    # combine_heads: lane-axis concat back to the (S, D) layout, then W_o.
    combined = jnp.concatenate(head_outs, axis=-1)                   # (S, D)
    out = jnp.dot(combined, wo_ref[...],
                  preferred_element_type=jnp.float32) + bo_ref[...]
    o_ref[...] = out.astype(o_ref.dtype)


# ---------------------------------------------------------------------------
# Module wrapper (only cheap stacking/transposes in plain JAX)
# ---------------------------------------------------------------------------

def init_mha_params(key, d_model):
    """Deterministic init mimicking nn.Linear's U(-1/sqrt(in), 1/sqrt(in))."""
    keys = jax.random.split(key, 8)
    bound = 1.0 / math.sqrt(d_model)

    def lin(kw, kb):
        w = jax.random.uniform(kw, (d_model, d_model), jnp.float32, -bound, bound)
        b = jax.random.uniform(kb, (d_model,), jnp.float32, -bound, bound)
        return w, b

    wq, bq = lin(keys[0], keys[1])
    wk, bk = lin(keys[2], keys[3])
    wv, bv = lin(keys[4], keys[5])
    wo, bo = lin(keys[6], keys[7])
    return dict(wq=wq, bq=bq, wk=wk, bk=bk, wv=wv, bv=bv, wo=wo, bo=bo)


def multi_head_attention(Q, K, V, params, num_heads, mask=None):
    # TODO(synk): optional `mask` argument (masked_fill with -1e9) not wired
    # into the kernel; the module's default call path uses mask=None.
    assert mask is None
    S, d_model = Q.shape
    assert d_model % num_heads == 0
    d_k = d_model // num_heads

    # Stack inputs/weights so the fused kernel gets everything in one shot.
    x = jnp.stack([Q, K, V])                                        # (3, S, D)
    wqkv = jnp.stack([params["wq"].T, params["wk"].T, params["wv"].T])  # (3, D, D)
    bqkv = jnp.stack([params["bq"], params["bk"], params["bv"]])[:, None, :]  # (3, 1, D)
    wo_t = params["wo"].T                                           # (D, D)
    bo = params["bo"].reshape(1, d_model)                           # (1, D)

    kernel = functools.partial(
        _mha_fused_kernel,
        num_heads=num_heads, d_k=d_k, scale=1.0 / math.sqrt(d_k))

    return pl.pallas_call(
        kernel,
        out_shape=jax.ShapeDtypeStruct((S, d_model), Q.dtype),
        grid=(1,),
        in_specs=[
            pl.BlockSpec((3, S, d_model), lambda i: (0, 0, 0)),
            pl.BlockSpec((3, d_model, d_model), lambda i: (0, 0, 0)),
            pl.BlockSpec((3, 1, d_model), lambda i: (0, 0, 0)),
            pl.BlockSpec((d_model, d_model), lambda i: (0, 0)),
            pl.BlockSpec((1, d_model), lambda i: (0, 0)),
        ],
        out_specs=pl.BlockSpec((S, d_model), lambda i: (0, 0)),
    )(x, wqkv, bqkv, wo_t, bo)


# ---------------------------------------------------------------------------
# Pure-JAX reference for correctness check
# ---------------------------------------------------------------------------

def mha_reference(Q, K, V, params, num_heads):
    S, d_model = Q.shape
    d_k = d_model // num_heads
    q = Q @ params["wq"].T + params["bq"]
    k = K @ params["wk"].T + params["bk"]
    v = V @ params["wv"].T + params["bv"]
    qh = q.reshape(S, num_heads, d_k).transpose(1, 0, 2)
    kh = k.reshape(S, num_heads, d_k).transpose(1, 0, 2)
    vh = v.reshape(S, num_heads, d_k).transpose(1, 0, 2)
    scores = jnp.einsum("hqd,hkd->hqk", qh, kh) / math.sqrt(d_k)
    probs = jax.nn.softmax(scores, axis=-1)
    attn = jnp.einsum("hqk,hkd->hqd", probs, vh)
    combined = attn.transpose(1, 0, 2).reshape(S, d_model)
    return combined @ params["wo"].T + params["bo"]


if __name__ == "__main__":
    key = jax.random.PRNGKey(0)
    k_params, k_q, k_k, k_v = jax.random.split(key, 4)

    seq_len = 8
    d_model = 32
    num_heads = 4

    params = init_mha_params(k_params, d_model)
    Q = jax.random.normal(k_q, (seq_len, d_model), jnp.float32)
    K = jax.random.normal(k_k, (seq_len, d_model), jnp.float32)
    V = jax.random.normal(k_v, (seq_len, d_model), jnp.float32)

    out = multi_head_attention(Q, K, V, params, num_heads)
    out = jax.block_until_ready(out)

    ref = mha_reference(Q, K, V, params, num_heads)
    assert out.shape == (seq_len, d_model)
    # Slightly relaxed tolerance for pl.reciprocal(approx=True) in softmax.
    assert jnp.allclose(out, ref, atol=2e-3, rtol=2e-3), "mismatch vs reference"

    print("KERNEL_OK")
</pallas_src>

<mosaic_0001>
module attributes {stable_mosaic.version = 11 : i64} {
  func.func @_mha_fused_kernel(%arg0: i32, %arg1: memref<3x8x32xf32, #tpu.memory_space<vmem>>, %arg2: memref<3x32x32xf32, #tpu.memory_space<vmem>>, %arg3: memref<3x1x32xf32, #tpu.memory_space<vmem>>, %arg4: memref<32x32xf32, #tpu.memory_space<vmem>>, %arg5: memref<1x32xf32, #tpu.memory_space<vmem>>, %arg6: memref<8x32xf32, #tpu.memory_space<vmem>>) attributes {dimension_semantics = [#tpu.dimension_semantics<arbitrary>], iteration_bounds = array<i64: 1>, scalar_prefetch = 0 : i64, scratch_operands = 0 : i64, tpu.core_type = #tpu.core_type<tc>, window_params = [{pipeline_mode = #tpu.pipeline_mode<synchronous>, transform_indices = @transform_0, window_bounds = array<i64: 3, 8, 32>}, {pipeline_mode = #tpu.pipeline_mode<synchronous>, transform_indices = @transform_1, window_bounds = array<i64: 3, 32, 32>}, {pipeline_mode = #tpu.pipeline_mode<synchronous>, transform_indices = @transform_2, window_bounds = array<i64: 3, 1, 32>}, {pipeline_mode = #tpu.pipeline_mode<synchronous>, transform_indices = @transform_3, window_bounds = array<i64: 32, 32>}, {pipeline_mode = #tpu.pipeline_mode<synchronous>, transform_indices = @transform_4, window_bounds = array<i64: 1, 32>}, {pipeline_mode = #tpu.pipeline_mode<synchronous>, transform_indices = @transform_5, window_bounds = array<i64: 8, 32>}]} {
    %c0 = arith.constant 0 : index
    %c0_0 = arith.constant 0 : index
    %c0_1 = arith.constant 0 : index
    %0 = vector.load %arg1[%c0, %c0_0, %c0_1] : memref<3x8x32xf32, #tpu.memory_space<vmem>>, vector<1x8x32xf32>
    %1 = vector.shape_cast %0 : vector<1x8x32xf32> to vector<8x32xf32>
    %c0_2 = arith.constant 0 : index
    %c0_3 = arith.constant 0 : index
    %c0_4 = arith.constant 0 : index
    %2 = vector.load %arg2[%c0_2, %c0_3, %c0_4] : memref<3x32x32xf32, #tpu.memory_space<vmem>>, vector<1x32x32xf32>
    %3 = vector.shape_cast %2 : vector<1x32x32xf32> to vector<32x32xf32>
    %cst = arith.constant dense<0.000000e+00> : vector<8x32xf32>
    %4 = tpu.matmul %1, %3, %cst {dimension_numbers = #tpu.dot_dimension_numbers<[1], [0], [0], [1], [0, 0, 1, 1], [], []>} : vector<8x32xf32>, vector<32x32xf32>, vector<8x32xf32> -> vector<8x32xf32>
    %c0_5 = arith.constant 0 : index
    %c0_6 = arith.constant 0 : index
    %c0_7 = arith.constant 0 : index
    %5 = vector.load %arg3[%c0_5, %c0_6, %c0_7] : memref<3x1x32xf32, #tpu.memory_space<vmem>>, vector<1x1x32xf32>
    %6 = vector.shape_cast %5 : vector<1x1x32xf32> to vector<1x32xf32>
    %7 = vector.broadcast %6 : vector<1x32xf32> to vector<8x32xf32>
    %8 = arith.addf %4, %7 : vector<8x32xf32>
    %c1 = arith.constant 1 : index
    %c0_8 = arith.constant 0 : index
    %c0_9 = arith.constant 0 : index
    %9 = vector.load %arg1[%c1, %c0_8, %c0_9] : memref<3x8x32xf32, #tpu.memory_space<vmem>>, vector<1x8x32xf32>
    %10 = vector.shape_cast %9 : vector<1x8x32xf32> to vector<8x32xf32>
    %c1_10 = arith.constant 1 : index
    %c0_11 = arith.constant 0 : index
    %c0_12 = arith.constant 0 : index
    %11 = vector.load %arg2[%c1_10, %c0_11, %c0_12] : memref<3x32x32xf32, #tpu.memory_space<vmem>>, vector<1x32x32xf32>
    %12 = vector.shape_cast %11 : vector<1x32x32xf32> to vector<32x32xf32>
    %cst_13 = arith.constant dense<0.000000e+00> : vector<8x32xf32>
    %13 = tpu.matmul %10, %12, %cst_13 {dimension_numbers = #tpu.dot_dimension_numbers<[1], [0], [0], [1], [0, 0, 1, 1], [], []>} : vector<8x32xf32>, vector<32x32xf32>, vector<8x32xf32> -> vector<8x32xf32>
    %c1_14 = arith.constant 1 : index
    %c0_15 = arith.constant 0 : index
    %c0_16 = arith.constant 0 : index
    %14 = vector.load %arg3[%c1_14, %c0_15, %c0_16] : memref<3x1x32xf32, #tpu.memory_space<vmem>>, vector<1x1x32xf32>
    %15 = vector.shape_cast %14 : vector<1x1x32xf32> to vector<1x32xf32>
    %16 = vector.broadcast %15 : vector<1x32xf32> to vector<8x32xf32>
    %17 = arith.addf %13, %16 : vector<8x32xf32>
    %c2 = arith.constant 2 : index
    %c0_17 = arith.constant 0 : index
    %c0_18 = arith.constant 0 : index
    %18 = vector.load %arg1[%c2, %c0_17, %c0_18] : memref<3x8x32xf32, #tpu.memory_space<vmem>>, vector<1x8x32xf32>
    %19 = vector.shape_cast %18 : vector<1x8x32xf32> to vector<8x32xf32>
    %c2_19 = arith.constant 2 : index
    %c0_20 = arith.constant 0 : index
    %c0_21 = arith.constant 0 : index
    %20 = vector.load %arg2[%c2_19, %c0_20, %c0_21] : memref<3x32x32xf32, #tpu.memory_space<vmem>>, vector<1x32x32xf32>
    %21 = vector.shape_cast %20 : vector<1x32x32xf32> to vector<32x32xf32>
    %cst_22 = arith.constant dense<0.000000e+00> : vector<8x32xf32>
    %22 = tpu.matmul %19, %21, %cst_22 {dimension_numbers = #tpu.dot_dimension_numbers<[1], [0], [0], [1], [0, 0, 1, 1], [], []>} : vector<8x32xf32>, vector<32x32xf32>, vector<8x32xf32> -> vector<8x32xf32>
    %c2_23 = arith.constant 2 : index
    %c0_24 = arith.constant 0 : index
    %c0_25 = arith.constant 0 : index
    %23 = vector.load %arg3[%c2_23, %c0_24, %c0_25] : memref<3x1x32xf32, #tpu.memory_space<vmem>>, vector<1x1x32xf32>
    %24 = vector.shape_cast %23 : vector<1x1x32xf32> to vector<1x32xf32>
    %25 = vector.broadcast %24 : vector<1x32xf32> to vector<8x32xf32>
    %26 = arith.addf %22, %25 : vector<8x32xf32>
    %27 = vector.extract_strided_slice %8 {offsets = [0, 0], sizes = [8, 8], strides = [1, 1]} : vector<8x32xf32> to vector<8x8xf32>
    %28 = vector.extract_strided_slice %17 {offsets = [0, 0], sizes = [8, 8], strides = [1, 1]} : vector<8x32xf32> to vector<8x8xf32>
    %29 = vector.extract_strided_slice %26 {offsets = [0, 0], sizes = [8, 8], strides = [1, 1]} : vector<8x32xf32> to vector<8x8xf32>
    %cst_26 = arith.constant dense<0.000000e+00> : vector<8x8xf32>
    %30 = tpu.matmul %27, %28, %cst_26 {dimension_numbers = #tpu.dot_dimension_numbers<[1], [1], [0], [0], [0, 0, 1, 0], [], []>} : vector<8x8xf32>, vector<8x8xf32>, vector<8x8xf32> -> vector<8x8xf32>
    %cst_27 = arith.constant 0.353553385 : f32
    %31 = vector.broadcast %cst_27 : f32 to vector<8x8xf32>
    %32 = arith.mulf %30, %31 : vector<8x8xf32>
    %cst_28 = arith.constant dense<0xFF800000> : vector<8xf32>
    %33 = vector.multi_reduction <maximumf>, %32, %cst_28 [1] : vector<8x8xf32> to vector<8xf32>
    %34 = vector.shape_cast %33 : vector<8xf32> to vector<8x1xf32>
    %35 = vector.broadcast %34 : vector<8x1xf32> to vector<8x8xf32>
    %36 = arith.subf %32, %35 : vector<8x8xf32>
    %37 = math.exp %36 : vector<8x8xf32>
    %cst_29 = arith.constant dense<0.000000e+00> : vector<8xf32>
    %38 = vector.multi_reduction <add>, %37, %cst_29 [1] : vector<8x8xf32> to vector<8xf32>
    %39 = vector.shape_cast %38 : vector<8xf32> to vector<8x1xf32>
    %40 = tpu.reciprocal %39 {approx = true} : vector<8x1xf32> -> vector<8x1xf32>
    %41 = vector.broadcast %40 : vector<8x1xf32> to vector<8x8xf32>
    %42 = arith.mulf %37, %41 : vector<8x8xf32>
    %cst_30 = arith.constant dense<0.000000e+00> : vector<8x8xf32>
    %43 = tpu.matmul %42, %29, %cst_30 {dimension_numbers = #tpu.dot_dimension_numbers<[1], [0], [0], [1], [0, 0, 1, 1], [], []>} : vector<8x8xf32>, vector<8x8xf32>, vector<8x8xf32> -> vector<8x8xf32>
    %44 = vector.extract_strided_slice %8 {offsets = [0, 8], sizes = [8, 8], strides = [1, 1]} : vector<8x32xf32> to vector<8x8xf32>
    %45 = vector.extract_strided_slice %17 {offsets = [0, 8], sizes = [8, 8], strides = [1, 1]} : vector<8x32xf32> to vector<8x8xf32>
    %46 = vector.extract_strided_slice %26 {offsets = [0, 8], sizes = [8, 8], strides = [1, 1]} : vector<8x32xf32> to vector<8x8xf32>
    %cst_31 = arith.constant dense<0.000000e+00> : vector<8x8xf32>
    %47 = tpu.matmul %44, %45, %cst_31 {dimension_numbers = #tpu.dot_dimension_numbers<[1], [1], [0], [0], [0, 0, 1, 0], [], []>} : vector<8x8xf32>, vector<8x8xf32>, vector<8x8xf32> -> vector<8x8xf32>
    %cst_32 = arith.constant 0.353553385 : f32
    %48 = vector.broadcast %cst_32 : f32 to vector<8x8xf32>
    %49 = arith.mulf %47, %48 : vector<8x8xf32>
    %cst_33 = arith.constant dense<0xFF800000> : vector<8xf32>
    %50 = vector.multi_reduction <maximumf>, %49, %cst_33 [1] : vector<8x8xf32> to vector<8xf32>
    %51 = vector.shape_cast %50 : vector<8xf32> to vector<8x1xf32>
    %52 = vector.broadcast %51 : vector<8x1xf32> to vector<8x8xf32>
    %53 = arith.subf %49, %52 : vector<8x8xf32>
    %54 = math.exp %53 : vector<8x8xf32>
    %cst_34 = arith.constant dense<0.000000e+00> : vector<8xf32>
    %55 = vector.multi_reduction <add>, %54, %cst_34 [1] : vector<8x8xf32> to vector<8xf32>
    %56 = vector.shape_cast %55 : vector<8xf32> to vector<8x1xf32>
    %57 = tpu.reciprocal %56 {approx = true} : vector<8x1xf32> -> vector<8x1xf32>
    %58 = vector.broadcast %57 : vector<8x1xf32> to vector<8x8xf32>
    %59 = arith.mulf %54, %58 : vector<8x8xf32>
    %cst_35 = arith.constant dense<0.000000e+00> : vector<8x8xf32>
    %60 = tpu.matmul %59, %46, %cst_35 {dimension_numbers = #tpu.dot_dimension_numbers<[1], [0], [0], [1], [0, 0, 1, 1], [], []>} : vector<8x8xf32>, vector<8x8xf32>, vector<8x8xf32> -> vector<8x8xf32>
    %61 = vector.extract_strided_slice %8 {offsets = [0, 16], sizes = [8, 8], strides = [1, 1]} : vector<8x32xf32> to vector<8x8xf32>
    %62 = vector.extract_strided_slice %17 {offsets = [0, 16], sizes = [8, 8], strides = [1, 1]} : vector<8x32xf32> to vector<8x8xf32>
    %63 = vector.extract_strided_slice %26 {offsets = [0, 16], sizes = [8, 8], strides = [1, 1]} : vector<8x32xf32> to vector<8x8xf32>
    %cst_36 = arith.constant dense<0.000000e+00> : vector<8x8xf32>
    %64 = tpu.matmul %61, %62, %cst_36 {dimension_numbers = #tpu.dot_dimension_numbers<[1], [1], [0], [0], [0, 0, 1, 0], [], []>} : vector<8x8xf32>, vector<8x8xf32>, vector<8x8xf32> -> vector<8x8xf32>
    %cst_37 = arith.constant 0.353553385 : f32
    %65 = vector.broadcast %cst_37 : f32 to vector<8x8xf32>
    %66 = arith.mulf %64, %65 : vector<8x8xf32>
    %cst_38 = arith.constant dense<0xFF800000> : vector<8xf32>
    %67 = vector.multi_reduction <maximumf>, %66, %cst_38 [1] : vector<8x8xf32> to vector<8xf32>
    %68 = vector.shape_cast %67 : vector<8xf32> to vector<8x1xf32>
    %69 = vector.broadcast %68 : vector<8x1xf32> to vector<8x8xf32>
    %70 = arith.subf %66, %69 : vector<8x8xf32>
    %71 = math.exp %70 : vector<8x8xf32>
    %cst_39 = arith.constant dense<0.000000e+00> : vector<8xf32>
    %72 = vector.multi_reduction <add>, %71, %cst_39 [1] : vector<8x8xf32> to vector<8xf32>
    %73 = vector.shape_cast %72 : vector<8xf32> to vector<8x1xf32>
    %74 = tpu.reciprocal %73 {approx = true} : vector<8x1xf32> -> vector<8x1xf32>
    %75 = vector.broadcast %74 : vector<8x1xf32> to vector<8x8xf32>
    %76 = arith.mulf %71, %75 : vector<8x8xf32>
    %cst_40 = arith.constant dense<0.000000e+00> : vector<8x8xf32>
    %77 = tpu.matmul %76, %63, %cst_40 {dimension_numbers = #tpu.dot_dimension_numbers<[1], [0], [0], [1], [0, 0, 1, 1], [], []>} : vector<8x8xf32>, vector<8x8xf32>, vector<8x8xf32> -> vector<8x8xf32>
    %78 = vector.extract_strided_slice %8 {offsets = [0, 24], sizes = [8, 8], strides = [1, 1]} : vector<8x32xf32> to vector<8x8xf32>
    %79 = vector.extract_strided_slice %17 {offsets = [0, 24], sizes = [8, 8], strides = [1, 1]} : vector<8x32xf32> to vector<8x8xf32>
    %80 = vector.extract_strided_slice %26 {offsets = [0, 24], sizes = [8, 8], strides = [1, 1]} : vector<8x32xf32> to vector<8x8xf32>
    %cst_41 = arith.constant dense<0.000000e+00> : vector<8x8xf32>
    %81 = tpu.matmul %78, %79, %cst_41 {dimension_numbers = #tpu.dot_dimension_numbers<[1], [1], [0], [0], [0, 0, 1, 0], [], []>} : vector<8x8xf32>, vector<8x8xf32>, vector<8x8xf32> -> vector<8x8xf32>
    %cst_42 = arith.constant 0.353553385 : f32
    %82 = vector.broadcast %cst_42 : f32 to vector<8x8xf32>
    %83 = arith.mulf %81, %82 : vector<8x8xf32>
    %cst_43 = arith.constant dense<0xFF800000> : vector<8xf32>
    %84 = vector.multi_reduction <maximumf>, %83, %cst_43 [1] : vector<8x8xf32> to vector<8xf32>
    %85 = vector.shape_cast %84 : vector<8xf32> to vector<8x1xf32>
    %86 = vector.broadcast %85 : vector<8x1xf32> to vector<8x8xf32>
    %87 = arith.subf %83, %86 : vector<8x8xf32>
    %88 = math.exp %87 : vector<8x8xf32>
    %cst_44 = arith.constant dense<0.000000e+00> : vector<8xf32>
    %89 = vector.multi_reduction <add>, %88, %cst_44 [1] : vector<8x8xf32> to vector<8xf32>
    %90 = vector.shape_cast %89 : vector<8xf32> to vector<8x1xf32>
    %91 = tpu.reciprocal %90 {approx = true} : vector<8x1xf32> -> vector<8x1xf32>
    %92 = vector.broadcast %91 : vector<8x1xf32> to vector<8x8xf32>
    %93 = arith.mulf %88, %92 : vector<8x8xf32>
    %cst_45 = arith.constant dense<0.000000e+00> : vector<8x8xf32>
    %94 = tpu.matmul %93, %80, %cst_45 {dimension_numbers = #tpu.dot_dimension_numbers<[1], [0], [0], [1], [0, 0, 1, 1], [], []>} : vector<8x8xf32>, vector<8x8xf32>, vector<8x8xf32> -> vector<8x8xf32>
    %95 = tpu.concatenate %43, %60, %77, %94 in 1 : vector<8x8xf32>, vector<8x8xf32>, vector<8x8xf32>, vector<8x8xf32> -> vector<8x32xf32>
    %c0_46 = arith.constant 0 : index
    %c0_47 = arith.constant 0 : index
    %96 = vector.load %arg4[%c0_46, %c0_47] : memref<32x32xf32, #tpu.memory_space<vmem>>, vector<32x32xf32>
    %cst_48 = arith.constant dense<0.000000e+00> : vector<8x32xf32>
    %97 = tpu.matmul %95, %96, %cst_48 {dimension_numbers = #tpu.dot_dimension_numbers<[1], [0], [0], [1], [0, 0, 1, 1], [], []>} : vector<8x32xf32>, vector<32x32xf32>, vector<8x32xf32> -> vector<8x32xf32>
    %c0_49 = arith.constant 0 : index
    %c0_50 = arith.constant 0 : index
    %98 = vector.load %arg5[%c0_49, %c0_50] : memref<1x32xf32, #tpu.memory_space<vmem>>, vector<1x32xf32>
    %99 = vector.broadcast %98 : vector<1x32xf32> to vector<8x32xf32>
    %100 = arith.addf %97, %99 : vector<8x32xf32>
    %c0_51 = arith.constant 0 : index
    %c0_52 = arith.constant 0 : index
    %101 = vector.load %arg6[%c0_51, %c0_52] : memref<8x32xf32, #tpu.memory_space<vmem>>, vector<8x32xf32>
    tpu.vector_store %arg6[%c0_51, %c0_52], %100 {strides = array<i32>} : memref<8x32xf32, #tpu.memory_space<vmem>>, vector<8x32xf32>,
    return
  }
  func.func @transform_0(%arg0: i32) -> (i32, i32, i32) {
    %c0_i32 = arith.constant 0 : i32
    %c0_i32_0 = arith.constant 0 : i32
    %c0_i32_1 = arith.constant 0 : i32
    %c0_i32_2 = arith.constant 0 : i32
    return %c0_i32, %c0_i32_0, %c0_i32_1 : i32, i32, i32
  }
  func.func @transform_1(%arg0: i32) -> (i32, i32, i32) {
    %c0_i32 = arith.constant 0 : i32
    %c0_i32_0 = arith.constant 0 : i32
    %c0_i32_1 = arith.constant 0 : i32
    %c0_i32_2 = arith.constant 0 : i32
    return %c0_i32, %c0_i32_0, %c0_i32_1 : i32, i32, i32
  }
  func.func @transform_2(%arg0: i32) -> (i32, i32, i32) {
    %c0_i32 = arith.constant 0 : i32
    %c0_i32_0 = arith.constant 0 : i32
    %c0_i32_1 = arith.constant 0 : i32
    %c0_i32_2 = arith.constant 0 : i32
    return %c0_i32, %c0_i32_0, %c0_i32_1 : i32, i32, i32
  }
  func.func @transform_3(%arg0: i32) -> (i32, i32) {
    %c0_i32 = arith.constant 0 : i32
    %c0_i32_0 = arith.constant 0 : i32
    %c0_i32_1 = arith.constant 0 : i32
    return %c0_i32, %c0_i32_0 : i32, i32
  }
  func.func @transform_4(%arg0: i32) -> (i32, i32) {
    %c0_i32 = arith.constant 0 : i32
    %c0_i32_0 = arith.constant 0 : i32
    %c0_i32_1 = arith.constant 0 : i32
    return %c0_i32, %c0_i32_0 : i32, i32
  }
  func.func @transform_5(%arg0: i32) -> (i32, i32) {
    %c0_i32 = arith.constant 0 : i32
    %c0_i32_0 = arith.constant 0 : i32
    %c0_i32_1 = arith.constant 0 : i32
    return %c0_i32, %c0_i32_0 : i32, i32
  }
}

</mosaic_0001>

<bundles_post_ra>
// kernel: tpu_custom_call.1
= control target key start
LH: loop header
LB: loop body
LE: loop exit
PB: predicated region body
PF: predicated region fallthrough
CT: control target
= control target key end

     0   :  { %10 = vsyncpa [#allocation3], 0  ;;  %s796_s0 = inlined_call_operand.hbm [shape: f32[3,8,32], index: 0, kind: input, shape index: {}]   ;;  %s797_s1 = inlined_call_operand.hbm [shape: f32[3,32,32], index: 1, kind: input, shape index: {}]   ;;  %s798_s2 = inlined_call_operand.hbm [shape: f32[3,1,32], index: 2, kind: input, shape index: {}]   ;;  %s799_s3 = inlined_call_operand.hbm [shape: f32[32,32], index: 3, kind: input, shape index: {}]   ;;  %s800_s4 = inlined_call_operand.vmem [shape: f32[1,32], index: 4, kind: input, shape index: {}]   ;;  %s801_s5 = inlined_call_operand.hbm [shape: f32[8,32], index: 5, kind: output, shape index: {}]  }
   0x1   :  { %11 = vsyncpa [#allocation6], 0 }
   0x2   :  { %12 = vsyncpa [#allocation9], 0 }
   0x3   :  { %13 = vsyncpa [#allocation4], 0  ;;  %s31_s20 = sshll.u32 %s797_s1, 4  ;;  %s693_s21 = smov [#allocation5]   ;;  %s32_s20 = int_to_ptr.hbm [resolvable:$true] %s31_s20 }
   0x4   :  { %s33_s22 = sshll.u32 %s693_s21, 4  ;;  %s18_s25 = sshll.u32 %s796_s0, 4  ;;  %s34_s22 = int_to_ptr.vmem [resolvable:$true] %s33_s22  ;;  %s19_s25 = int_to_ptr.hbm [resolvable:$true] %s18_s25 }
   0x5   :  { %s694_s26 = smov 128   ;;  %s695_s27 = smov 8  }
   0x6   :  { %39 = dma.hbm_to_vmem [thread:$0]  %s32_s20, 1536, %s34_s22, [#allocation6], %s694_s26, %s694_s26, %s695_s27  }
   0x7   :  { %s696_s28 = smov [#allocation2]   ;;  %s44_s7 = sshll.u32 %s798_s2, 4  ;;  %s45_s7 = int_to_ptr.hbm [resolvable:$true] %s44_s7 }
   0x8   :  { %s20_s29 = sshll.u32 %s696_s28, 4  ;;  %s697_s1 = smov [#allocation7]   ;;  %s21_s29 = int_to_ptr.vmem [resolvable:$true] %s20_s29 }
   0x9   :  { %26 = dma.hbm_to_vmem [thread:$0]  %s19_s25, 384, %s21_s29, [#allocation3], %s694_s26, %s694_s26, %s695_s27  }
   0xa   :  { %s46_s8 = sshll.u32 %s697_s1, 4  ;;  %s57_s10 = sshll.u32 %s799_s3, 4  ;;  %s47_s8 = int_to_ptr.vmem [resolvable:$true] %s46_s8  ;;  %s58_s10 = int_to_ptr.hbm [resolvable:$true] %s57_s10 }
   0xb   :  { %s698_s11 = smov 16   ;;  %s699_s12 = smov 1  }
   0xc   :  { %52 = dma.hbm_to_vmem [thread:$0]  %s45_s7, 48, %s47_s8, [#allocation6], %s698_s11, %s698_s11, %s699_s12  }
   0xd   :  { %s700_s13 = smov [#allocation8]  }
   0xe   :  { %s59_s14 = sshll.u32 %s700_s13, 4  ;;  %s60_s14 = int_to_ptr.vmem [resolvable:$true] %s59_s14 }
   0xf   :  { %65 = dma.hbm_to_vmem [thread:$0]  %s58_s10, 512, %s60_s14, [#allocation9], %s694_s26, %s694_s26, %s695_s27  }
  0x10   :  { %685 = dma.done.wait [#allocation3], 384  }
  0x11   :  { %686 = vsyncadd [#allocation3], 4294966912 }
  0x12   :  { %687 = dma.done.wait [#allocation6], 1584  }
  0x13   :  { %688 = vsyncadd [#allocation6], 4294965712 }
  0x14   :  { %689 = dma.done.wait [#allocation9], 512  }
  0x15   :  { %690 = vsyncadd [#allocation9], 4294966784  ;;  %v123_v0 = vld [vmem:[#allocation5 + $0x38] sm:$0xff]  ;;  %v122_v1 = vld [vmem:[#allocation5 + $0x30] sm:$0xff]  ;;  %vm93_vm0 = vcmask 261120   ;;  %vm187_vm1 = vcmask 64512  }
  0x16   :  { %v88_v2 = vld [vmem:[#allocation5 + $0x18] sm:$0xff]  ;;  %144 = vmatpush.msra.mxu1 %v123_v0  ;;  %v87_v3 = vld [vmem:[#allocation5 + $0x10] sm:$0xff]  ;;  %v121_v4 = vld [vmem:[#allocation5 + $0x28] sm:$0xff]  ;;  %s701_s2 = smov 104   ;;  %s702_s3 = smov 120   ;;  %vm461_vm2 = vcmask 130048  }
  0x17   :  { %109 = vmatpush.msra.mxu0 %v88_v2  ;;  %v86_v5 = vld [vmem:[#allocation5 + $0x8] sm:$0xff]  ;;  %v120_v6 = vld [vmem:[#allocation5 + $0x20] sm:$0xff]  ;;  %v118_v8 = vld [vmem:[#allocation2 + $0x8] sm:$0xff]  ;;  %s703_s15 = smov 112   ;;  %s704_s16 = smov 24   ;;  %vm463_vm3 = vcmask 195584  }
  0x18   :  { %145 = vmatpush.msra.mxu1 %v122_v1  ;;  %v85_v7 = vld [vmem:[#allocation5] sm:$0xff]  ;;  %v84_v9 = vld [vmem:[#allocation2] sm:$0xff]  ;;  %v158_v16 = vld [vmem:[#allocation5 + $0x58] sm:$0xff]  ;;  %s705_s19 = smov [#allocation10]   ;;  %s504_s23 = sshll.u32 %s801_s5, 4  ;;  %s505_s23 = int_to_ptr.hbm [resolvable:$true] %s504_s23 }
  0x19   :  { %110 = vmatpush.msra.mxu0 %v87_v3  ;;  %v545_v10 = vld [vmem:[#allocation7 + $0x1] ss:$0 sm:$0xff]  ;;  %v546_v11 = vld [vmem:[#allocation7] ss:$0 sm:$0xff]  ;;  %v157_v17 = vld [vmem:[#allocation5 + $0x50] sm:$0xff]  ;;  %179 = vmatpush.msra.mxu2 %v158_v16  ;;  %s502_s20 = sshll.u32 %s705_s19, 4  ;;  %s503_s20 = int_to_ptr.vmem [resolvable:$true] %s502_s20 }
  0x1a   :  { %146 = vmatpush.msra.mxu1 %v121_v4  ;;  %v156_v18 = vld [vmem:[#allocation5 + $0x48] sm:$0xff]  ;;  %v155_v19 = vld [vmem:[#allocation5 + $0x40] sm:$0xff]  ;;  %v153_v20 = vld [vmem:[#allocation2 + $0x10] sm:$0xff] }
  0x1b   :  { %111 = vmatpush.msra.mxu0 %v86_v5  ;;  %180 = vmatpush.msra.mxu2 %v157_v17  ;;  %v547_v30 = vld [vmem:[#allocation7 + $0x2] ss:$0 sm:$0xff] }
  0x1c   :  { %147 = vmatpush.msra.mxu1 %v120_v6  ;;  %v468_v17 = vld [vmem:[#allocation8 + $0x18] sm:$0xff] }
  0x1d   :  { %112 = vmatpush.msra.mxu0 %v85_v7  ;;  %517 = vmatmul.msk.f32.vlgmr.msra.gmra.mxu1 %vm93_vm0, %v118_v8 }
  0x1e   :  { %516 = vmatmul.msk.f32.vlgmr.msra.gmra.mxu0 %vm93_vm0, %v84_v9  ;;  %181 = vmatpush.msra.mxu2 %v156_v18  ;;  %v467_v18 = vld [vmem:[#allocation8 + $0x10] sm:$0xff] }
  0x20   :  { %182 = vmatpush.msra.mxu2 %v155_v19  ;;  %v466_v19 = vld [vmem:[#allocation8 + $0x8] sm:$0xff] }
  0x21   :  { %518 = vmatmul.msk.f32.vlgmr.msra.gmra.mxu2 %vm93_vm0, %v153_v20  ;;  %v465_v20 = vld [vmem:[#allocation8] sm:$0xff] }
  0x9a   :  { %v149_v12 = vpop.f32.mrf.mxu1 }
  0x9b   :  { %v114_v13 = vpop.f32.mrf.mxu0  ;;  %v150_v14 = vadd.f32 %v545_v10, %v149_v12 }
  0x9c   :  { %v115_v15 = vadd.f32 %v546_v11, %v114_v13 }
  0x9d   :  { %384 = vrot.lane.b32.xlu2 %v150_v14, %s701_s2  ;;  %251 = vrot.lane.b32.xlu1 %v150_v14, %s702_s3 }
  0x9e   :  { %318 = vrot.lane.b32.xlu0 %v150_v14, %s703_s15  ;;  %519 = vmatpush.xpose.msk.msra.mxu3 %vm187_vm1, %v150_v14 }
  0xa1   :  { %520 = vmatmul.msk.f32.vlgmr.msra.gmra.mxu3 %vm187_vm1, %v115_v15 }
  0xa4   :  { %v184_v31 = vpop.f32.mrf.mxu2 }
  0xa5   :  { %382 = vrot.lane.b32.xlu2 %v115_v15, %s701_s2  ;;  %249 = vrot.lane.b32.xlu1 %v115_v15, %s702_s3  ;;  %v185_v32 = vadd.f32 %v547_v30, %v184_v31 }
  0xa6   :  { %316 = vrot.lane.b32.xlu0 %v115_v15, %s703_s15 }
  0xa7   :  { %244 = vmatpush.msrb.mxu3 %v185_v32 }
  0xf7   :  { %v385_v22 = vpop.permute.xlu2 %384 }
  0xff   :  { %v383_v26 = vpop.permute.xlu2 %382 }
 0x10f   :  { %v252_v21 = vpop.permute.xlu1 %251 }
 0x110   :  { %v319_v23 = vpop.permute.xlu0 %318  ;;  %522 = vmatpush.xpose.msk.msrb.mxu0 %vm187_vm1, %v252_v21 }
 0x111   :  { %525 = vmatpush.xpose.msk.msrb.mxu2 %vm187_vm1, %v319_v23 }
 0x114   :  { %528 = vmatpush.xpose.msk.msra.mxu0 %vm187_vm1, %v385_v22 }
 0x115   :  { %488 = vmatpush.msra.mxu2 %v468_v17 }
 0x117   :  { %v250_v24 = vpop.permute.xlu1 %249  ;;  %489 = vmatpush.msra.mxu2 %v467_v18 }
 0x118   :  { %v317_v25 = vpop.permute.xlu0 %316  ;;  %523 = vmatmul.msk.f32.vlgmr.msrb.gmra.mxu0 %vm187_vm1, %v250_v24 }
 0x119   :  { %526 = vmatmul.msk.f32.vlgmr.msrb.gmra.mxu2 %vm187_vm1, %v317_v25 }
 0x11a   :  { %490 = vmatpush.msra.mxu2 %v466_v19 }
 0x11c   :  { %491 = vmatpush.msra.mxu2 %v465_v20 }
 0x120   :  { %529 = vmatmul.msk.f32.vlgmr.msra.gmra.mxu0 %vm187_vm1, %v383_v26 }
 0x124   :  { %v211_v27 = vpop.f32.mrf.mxu3 }
 0x125   :  { %v214_v28 = vmul.f32 0.35355338, %v211_v27  ;;  %v548_v27 = vld [vmem:[%s800_s4] ss:$0 sm:$0xff] }
 0x127   :  { %v215_v29 = vsel %vm187_vm1, %v214_v28, -inf }
 0x128   :  { %216 = vmax.xlane.f32.xlu0 %v215_v29 }
 0x195   :  { %v274_v33 = vpop.f32.mrf.mxu0 }
 0x196   :  { %v277_v34 = vmul.f32 0.35355338, %v274_v33 }
 0x198   :  { %v278_v35 = vsel %vm187_vm1, %v277_v34, -inf }
 0x199   :  { %279 = vmax.xlane.f32.xlu1 %v278_v35 }
 0x19b   :  { %v217_v36 = vpop.xlane.xlu0 %216 }
 0x19c   :  { %v218_v37 = vsub.f32 %v214_v28, %v217_v36  ;;  %v341_v38 = vpop.f32.mrf.mxu2 }
 0x19d   :  { %v344_v39 = vmul.f32 0.35355338, %v341_v38  ;;  %v407_v42 = vpop.f32.mrf.mxu0 }
 0x19e   :  { %v219_v40 = vmul.f32 1.442695, %v218_v37  ;;  %v410_v43 = vmul.f32 0.35355338, %v407_v42 }
 0x19f   :  { %v345_v41 = vsel %vm187_vm1, %v344_v39, -inf }
 0x1a0   :  { %549 = vpow2.f32 %v219_v40  ;;  %346 = vmax.xlane.f32.xlu2 %v345_v41  ;;  %v411_v45 = vsel %vm187_vm1, %v410_v43, -inf }
 0x1a6   :  { %v550_v44 = vpop.eup %549 }
 0x1a7   :  { %v221_v46 = vsel %vm187_vm1, %v550_v44, 0.0 }
 0x1a8   :  { %412 = vmax.xlane.f32.xlu2 %v411_v45  ;;  %222 = vadd.xlane.f32.xlu0 %v221_v46 }
 0x20c   :  { %v280_v47 = vpop.xlane.xlu1 %279 }
 0x20d   :  { %v281_v48 = vsub.f32 %v277_v34, %v280_v47 }
 0x20f   :  { %v282_v49 = vmul.f32 1.442695, %v281_v48 }
 0x211   :  { %551 = vpow2.f32 %v282_v49 }
 0x213   :  { %v347_v50 = vpop.xlane.xlu2 %346 }
 0x214   :  { %v348_v51 = vsub.f32 %v344_v39, %v347_v50 }
 0x216   :  { %v349_v52 = vmul.f32 1.442695, %v348_v51 }
 0x217   :  { %v552_v53 = vpop.eup %551 }
 0x218   :  { %553 = vpow2.f32 %v349_v52  ;;  %v284_v54 = vsel %vm187_vm1, %v552_v53, 0.0 }
 0x219   :  { %285 = vadd.xlane.f32.xlu1 %v284_v54 }
 0x21b   :  { %v413_v55 = vpop.xlane.xlu2 %412  ;;  %v223_v56 = vpop.xlane.xlu0 %222 }
 0x21c   :  { %v414_v57 = vsub.f32 %v410_v43, %v413_v55  ;;  %555 = vrcp.f32 %v223_v56 }
 0x21e   :  { %v554_v58 = vpop.eup %553  ;;  %v415_v59 = vmul.f32 1.442695, %v414_v57 }
 0x21f   :  { %v351_v60 = vsel %vm187_vm1, %v554_v58, 0.0 }
 0x220   :  { %557 = vpow2.f32 %v415_v59  ;;  %352 = vadd.xlane.f32.xlu2 %v351_v60 }
 0x222   :  { %v556_v61 = vpop.eup %555 }
 0x223   :  { %v225_v62 = vmul.f32 %v556_v61, %v550_v44 }
 0x225   :  { %521 = vmatmul.msk.f32.vlgmr.msrb.gmra.mxu3 %vm187_vm1, %v225_v62 }
 0x226   :  { %v558_v63 = vpop.eup %557 }
 0x227   :  { %v417_v0 = vsel %vm187_vm1, %v558_v63, 0.0 }
 0x228   :  { %418 = vadd.xlane.f32.xlu0 %v417_v0 }
 0x232   :  { %290 = vrot.lane.b32.xlu1 %v185_v32, %s702_s3 }
 0x238   :  { %356 = vrot.lane.b32.xlu2 %v185_v32, %s703_s15 }
 0x23c   :  { %422 = vrot.lane.b32.xlu0 %v185_v32, %s701_s2 }
 0x28c   :  { %v286_v2 = vpop.xlane.xlu1 %285 }
 0x293   :  { %v353_v1 = vpop.xlane.xlu2 %352 }
 0x294   :  { %559 = vrcp.f32 %v353_v1 }
 0x295   :  { %561 = vrcp.f32 %v286_v2 }
 0x29a   :  { %v560_v3 = vpop.eup %559 }
 0x29b   :  { %v355_v4 = vmul.f32 %v560_v3, %v554_v58  ;;  %v357_v5 = vpop.permute.xlu2 %356  ;;  %v562_v6 = vpop.eup %561 }
 0x29c   :  { %377 = vmatpush.msra.mxu3 %v357_v5  ;;  %v419_v7 = vpop.xlane.xlu0 %418  ;;  %v288_v9 = vmul.f32 %v562_v6, %v552_v53 }
 0x29d   :  { %527 = vmatmul.msk.f32.vlgmr.msra.gmra.mxu3 %vm187_vm1, %v355_v4  ;;  %563 = vrcp.f32 %v419_v7 }
 0x2a3   :  { %v564_v10 = vpop.eup %563 }
 0x2a4   :  { %v291_v8 = vpop.permute.xlu1 %290  ;;  %v421_v11 = vmul.f32 %v564_v10, %v558_v63 }
 0x2a5   :  { %311 = vmatpush.msrb.mxu1 %v291_v8 }
 0x2a6   :  { %524 = vmatmul.msk.f32.vlgmr.msrb.gmra.mxu1 %vm187_vm1, %v288_v9 }
 0x2a8   :  { %v246_v13 = vpop.f32.mrf.mxu3 }
 0x2ae   :  { %v423_v12 = vpop.permute.xlu0 %422 }
 0x2af   :  { %443 = vmatpush.msra.mxu1 %v423_v12 }
 0x2b0   :  { %530 = vmatmul.msk.f32.vlgmr.msra.gmra.mxu1 %vm187_vm1, %v421_v11 }
 0x320   :  { %v379_v14 = vpop.f32.mrf.mxu3 }
 0x321   :  { %453 = vrot.lane.b32.xlu0 %v379_v14, %s698_s11 }
 0x323   :  { %v313_v15 = vpop.f32.mrf.mxu1 }
 0x324   :  { %449 = vrot.lane.b32.xlu1 %v313_v15, %s695_s27 }
 0x32d   :  { %v445_v16 = vpop.f32.mrf.mxu1 }
 0x32e   :  { %457 = vrot.lane.b32.xlu2 %v445_v16, %s704_s16 }
 0x388   :  { %v458_v24 = vpop.permute.xlu2 %457 }
 0x393   :  { %v454_v22 = vpop.permute.xlu0 %453 }
 0x396   :  { %v450_v21 = vpop.permute.xlu1 %449 }
 0x397   :  { %v460_v23 = vsel %vm187_vm1, %v246_v13, %v450_v21 }
 0x398   :  { %v462_v25 = vsel %vm461_vm2, %v460_v23, %v454_v22 }
 0x399   :  { %v464_v26 = vsel %vm463_vm3, %v462_v25, %v458_v24 }
 0x39a   :  { %531 = vmatmul.msk.f32.vlgmr.msra.gmra.mxu2 %vm93_vm0, %v464_v26 }
 0x41d   :  { %v493_v28 = vpop.f32.mrf.mxu2 }
 0x41e   :  { %v494_v29 = vadd.f32 %v548_v27, %v493_v28 }
 0x420   :  { %496 = vst.msk [vmem:[#allocation10] sm:$0xff] %vm93_vm0, %v494_v29 }
 0x421   :  { %507 = dma.vmem_to_hbm [thread:$0]  %s503_s20, 128, %s505_s23, [#allocation4]  }
 0x422   :  { %691 = dma.done.wait [#allocation4], 128  }
 0x423   :  { %692 = vsyncadd [#allocation4], 4294967168 }
 0x424   :  { %512 = vsyncpa [#allocation3], 1 }
 0x425   :  { %513 = vsyncpa [#allocation6], 1 }
 0x426   :  { %514 = vsyncpa [#allocation9], 1 }
 0x427   :  { %515 = vsyncpa [#allocation4], 1 }

</bundles_post_ra>
